<compile_context>
chip_gen: v7x
topology: tpu7x:2x2x1
jax: 0.10.0
libtpu: 0.0.40
codegen_flags: <defaults>
</compile_context>

<pallas_src>
import jax
import jax.numpy as jnp
from jax.experimental import pallas as pl
from jax.experimental.pallas import tpu as pltpu


def _round_up(v, m):
    return (v + m - 1) // m * m


def _itemsize(dt):
    return jnp.dtype(dt).itemsize


# --------------------------------------------------------------- kernels ----

def gru_kernel_zero_h(x_ref, wih_ref, bih_ref, bhh_ref, out_ref):
    """Default (hidden_state=None) path: h_t == 0.

    hidden2hidden(zeros) == b_hh, and the blend collapses to (1 - z) * n, so
    W_hh is never loaded nor multiplied.
    """
    xh = jnp.dot(x_ref[...], wih_ref[...],
                 preferred_element_type=jnp.float32) + bih_ref[...]
    hh = bhh_ref[...]                       # hidden2hidden(zeros) == b_hh
    z = jax.nn.sigmoid(xh + hh)             # reset_gate == update_gate (ref quirk)
    n = jnp.tanh(xh + z * hh)
    out_ref[...] = ((1.0 - z) * n).astype(out_ref.dtype)


def gru_kernel(x_ref, h_ref, hs_ref, wih_ref, bih_ref, whh_ref, bhh_ref,
               out_ref):
    """Explicit carry / hidden_state path."""
    xh = jnp.dot(x_ref[...], wih_ref[...],
                 preferred_element_type=jnp.float32) + bih_ref[...]
    hh = jnp.dot(h_ref[...], whh_ref[...],
                 preferred_element_type=jnp.float32) + bhh_ref[...]
    z = jax.nn.sigmoid(xh + hh)             # reset_gate == update_gate (ref quirk)
    n = jnp.tanh(xh + z * hh)
    hs = hs_ref[...].astype(jnp.float32)
    # z*hs + (1-z)*n == n + z*(hs - n)   (one fewer VPU op)
    out_ref[...] = (n + z * (hs - n)).astype(out_ref.dtype)


# ---------------------------------------------------------------- wrapper ---

def prepare_gru_params(w_ih, b_ih, w_hh, b_hh):
    """Pad + bf16-cast weights ONCE (parameter-init time); reuse across calls.

    w_ih : [I, H]  (torch Linear weight [H, I] transposed)
    w_hh : [H, H]
    b_ih, b_hh : [H]
    """
    I, H = w_ih.shape
    I_pad = _round_up(I, 128)     # lane-dense K for the x matmul
    H_pad = _round_up(H, 128)     # lane-dense output / K for the h matmul

    def pad2(a, rows, cols, dt):
        return jnp.pad(a, ((0, rows - a.shape[0]),
                           (0, cols - a.shape[1]))).astype(dt)

    return {
        "I": I, "H": H, "I_pad": I_pad, "H_pad": H_pad,
        "w_ih": pad2(w_ih, I_pad, H_pad, jnp.bfloat16),
        "w_hh": pad2(w_hh, H_pad, H_pad, jnp.bfloat16),
        "b_ih": pad2(b_ih.reshape(1, H), 1, H_pad, jnp.float32),
        "b_hh": pad2(b_hh.reshape(1, H), 1, H_pad, jnp.float32),
    }


def _batch_tile_cap():
    """256-row LHS tiles on v6e/v7x (256x256 MXU); 128 on v5-family."""
    try:
        kind = jax.devices()[0].device_kind.lower()
        if "v5" in kind:
            return 128
    except Exception:
        pass
    return 256


def gru_cell_forward(x, carry, hidden_state, params):
    """Mirrors GruCell.forward. Returns (out, out).

    x            : [B, I]
    carry        : (h_t, _) with h_t [B, H]; ignored when hidden_state is None
                   (torch overwrites carry with zeros on that path).
    hidden_state : [B, H] or None
    params       : dict from prepare_gru_params().
    """
    B, I = x.shape
    assert I == params["I"]
    H, I_pad, H_pad = params["H"], params["I_pad"], params["H_pad"]
    out_dtype = x.dtype
    use_hs = hidden_state is not None

    # bf16 MXU operands pack 16 rows per vreg -> pad batch to a multiple of 16.
    B_pad = _round_up(B, 16)
    bm = min(B_pad, _batch_tile_cap())
    B_pad = _round_up(B_pad, bm)
    ni = B_pad // bm

    tn = min(H_pad, 512)          # hidden/output column tile (lane-dense)
    nj = H_pad // tn

    def maybe_pad(a, rows, cols, dt):
        r, c = a.shape
        if (r, c) != (rows, cols):
            a = jnp.pad(a, ((0, rows - r), (0, cols - c)))
        return a.astype(dt)

    x_p = maybe_pad(x, B_pad, I_pad, jnp.bfloat16)

    # Grid = (hidden-column tiles, batch tiles). Column tiles outer so each
    # weight-column block is DMA'd once and stays resident across batch tiles.
    grid = (nj, ni)
    x_spec = pl.BlockSpec((bm, I_pad), lambda j, i: (i, 0))
    h_spec = pl.BlockSpec((bm, H_pad), lambda j, i: (i, 0))
    col_spec = pl.BlockSpec((bm, tn), lambda j, i: (i, j))
    out_spec = pl.BlockSpec((bm, tn), lambda j, i: (i, j))
    wih_spec = pl.BlockSpec((I_pad, tn), lambda j, i: (0, j))
    whh_spec = pl.BlockSpec((H_pad, tn), lambda j, i: (0, j))
    b_spec = pl.BlockSpec((1, tn), lambda j, i: (0, j))

    def blk_bytes(shape, dt):
        return _round_up(shape[0], 8) * shape[1] * _itemsize(dt)

    if use_hs:
        h_t, _ = carry
        h_p = maybe_pad(h_t, B_pad, H_pad, jnp.bfloat16)
        hs_p = maybe_pad(hidden_state, B_pad, H_pad, jnp.bfloat16)
        in_arrays = [x_p, h_p, hs_p, params["w_ih"], params["b_ih"],
                     params["w_hh"], params["b_hh"]]
        in_specs = [x_spec, h_spec, col_spec, wih_spec, b_spec, whh_spec, b_spec]
        kernel = gru_kernel
        vmem_need = (blk_bytes((bm, I_pad), jnp.bfloat16)
                     + blk_bytes((bm, H_pad), jnp.bfloat16)
                     + blk_bytes((bm, tn), jnp.bfloat16)
                     + blk_bytes((I_pad, tn), jnp.bfloat16)
                     + blk_bytes((H_pad, tn), jnp.bfloat16)
                     + 2 * blk_bytes((1, tn), jnp.float32)
                     + blk_bytes((bm, tn), out_dtype))
    else:
        # torch: hidden_state=None -> hidden_state=zeros, carry=(zeros, zeros).
        in_arrays = [x_p, params["w_ih"], params["b_ih"], params["b_hh"]]
        in_specs = [x_spec, wih_spec, b_spec, b_spec]
        kernel = gru_kernel_zero_h
        vmem_need = (blk_bytes((bm, I_pad), jnp.bfloat16)
                     + blk_bytes((I_pad, tn), jnp.bfloat16)
                     + 2 * blk_bytes((1, tn), jnp.float32)
                     + blk_bytes((bm, tn), out_dtype))

    # Double-buffered blocks + margin, capped at v7x physical VMEM.
    vmem_limit = int(min(max(2 * vmem_need + (2 << 20), 16 << 20), 64 << 20))

    out_p = pl.pallas_call(
        kernel,
        out_shape=jax.ShapeDtypeStruct((B_pad, H_pad), out_dtype),
        grid=grid,
        in_specs=in_specs,
        out_specs=out_spec,
        compiler_params=pltpu.CompilerParams(
            dimension_semantics=("parallel", "parallel"),
            vmem_limit_bytes=vmem_limit),
    )(*in_arrays)

    out = out_p if (B_pad == B and H_pad == H) else out_p[:B, :H]
    return (out, out)


if __name__ == "__main__":
    batch = 2
    input_size = 16
    hidden_size = 32

    key = jax.random.PRNGKey(0)
    k_x, k_wih, k_bih, k_whh, k_bhh = jax.random.split(key, 5)

    # Deterministic parameter init ~ Normal(0, 0.02), matching init_weights_normal().
    # Stored already transposed: [in_features, out_features].
    w_ih = 0.02 * jax.random.normal(k_wih, (input_size, hidden_size), dtype=jnp.float32)
    b_ih = 0.02 * jax.random.normal(k_bih, (hidden_size,), dtype=jnp.float32)
    w_hh = 0.02 * jax.random.normal(k_whh, (hidden_size, hidden_size), dtype=jnp.float32)
    b_hh = 0.02 * jax.random.normal(k_bhh, (hidden_size,), dtype=jnp.float32)

    x = jax.random.normal(k_x, (batch, input_size), dtype=jnp.float32)

    # Pad + bf16-cast the weights once; reuse across both calls below.
    params = prepare_gru_params(w_ih, b_ih, w_hh, b_hh)

    # --- default torch path: hidden_state=None -> zeros, carry=(zeros, zeros) ---
    out, out2 = gru_cell_forward(x, None, None, params)
    jax.block_until_ready(out)
    assert out.shape == (batch, hidden_size)
    assert out.dtype == jnp.float32

    # Pure-JAX f32 reference.
    xh = x @ w_ih + b_ih
    hh = jnp.zeros((batch, hidden_size), jnp.float32) @ w_hh + b_hh
    z = jax.nn.sigmoid(xh + hh)
    n = jnp.tanh(xh + z * hh)
    ref = (1.0 - z) * n
    assert jnp.allclose(out, ref, atol=2e-2, rtol=2e-2), float(jnp.max(jnp.abs(out - ref)))

    # --- explicit carry / hidden_state path ---
    h0 = 0.1 * jax.random.normal(k_whh, (batch, hidden_size), dtype=jnp.float32)
    hs = 0.1 * jax.random.normal(k_bhh, (batch, hidden_size), dtype=jnp.float32)
    out_g, _ = gru_cell_forward(x, (h0, h0), hs, params)
    jax.block_until_ready(out_g)
    xh = x @ w_ih + b_ih
    hh = h0 @ w_hh + b_hh
    z = jax.nn.sigmoid(xh + hh)
    n = jnp.tanh(xh + z * hh)
    ref_g = z * hs + (1.0 - z) * n
    assert jnp.allclose(out_g, ref_g, atol=2e-2, rtol=2e-2), float(jnp.max(jnp.abs(out_g - ref_g)))

    print("KERNEL_OK")
</pallas_src>

<mosaic_0001>
module attributes {stable_mosaic.version = 11 : i64} {
  func.func @gru_kernel_zero_h(%arg0: i32, %arg1: i32, %arg2: memref<16x128xbf16, #tpu.memory_space<vmem>>, %arg3: memref<128x128xbf16, #tpu.memory_space<vmem>>, %arg4: memref<1x128xf32, #tpu.memory_space<vmem>>, %arg5: memref<1x128xf32, #tpu.memory_space<vmem>>, %arg6: memref<16x128xf32, #tpu.memory_space<vmem>>) attributes {dimension_semantics = [#tpu.dimension_semantics<parallel>, #tpu.dimension_semantics<parallel>], iteration_bounds = array<i64: 1, 1>, scalar_prefetch = 0 : i64, scratch_operands = 0 : i64, tpu.core_type = #tpu.core_type<tc>, window_params = [{transform_indices = @transform_0, window_bounds = array<i64: 16, 128>}, {transform_indices = @transform_1, window_bounds = array<i64: 128, 128>}, {transform_indices = @transform_2, window_bounds = array<i64: 1, 128>}, {transform_indices = @transform_3, window_bounds = array<i64: 1, 128>}, {transform_indices = @transform_4, window_bounds = array<i64: 16, 128>}]} {
    %c0 = arith.constant 0 : index
    %c0_0 = arith.constant 0 : index
    %0 = vector.load %arg2[%c0, %c0_0] : memref<16x128xbf16, #tpu.memory_space<vmem>>, vector<16x128xbf16>
    %c0_1 = arith.constant 0 : index
    %c0_2 = arith.constant 0 : index
    %1 = vector.load %arg3[%c0_1, %c0_2] : memref<128x128xbf16, #tpu.memory_space<vmem>>, vector<128x128xbf16>
    %cst = arith.constant dense<0.000000e+00> : vector<16x128xf32>
    %2 = tpu.matmul %0, %1, %cst {dimension_numbers = #tpu.dot_dimension_numbers<[1], [0], [0], [1], [0, 0, 1, 1], [], []>} : vector<16x128xbf16>, vector<128x128xbf16>, vector<16x128xf32> -> vector<16x128xf32>
    %c0_3 = arith.constant 0 : index
    %c0_4 = arith.constant 0 : index
    %3 = vector.load %arg4[%c0_3, %c0_4] : memref<1x128xf32, #tpu.memory_space<vmem>>, vector<1x128xf32>
    %4 = vector.broadcast %3 : vector<1x128xf32> to vector<16x128xf32>
    %5 = arith.addf %2, %4 : vector<16x128xf32>
    %c0_5 = arith.constant 0 : index
    %c0_6 = arith.constant 0 : index
    %6 = vector.load %arg5[%c0_5, %c0_6] : memref<1x128xf32, #tpu.memory_space<vmem>>, vector<1x128xf32>
    %7 = vector.broadcast %6 : vector<1x128xf32> to vector<16x128xf32>
    %8 = arith.addf %5, %7 : vector<16x128xf32>
    %9 = arith.negf %8 : vector<16x128xf32>
    %10 = math.exp %9 : vector<16x128xf32>
    %cst_7 = arith.constant 1.000000e+00 : f32
    %11 = vector.broadcast %cst_7 : f32 to vector<16x128xf32>
    %12 = arith.addf %11, %10 : vector<16x128xf32>
    %13 = arith.divf %11, %12 : vector<16x128xf32>
    %14 = vector.broadcast %6 : vector<1x128xf32> to vector<16x128xf32>
    %15 = arith.mulf %13, %14 : vector<16x128xf32>
    %16 = arith.addf %5, %15 : vector<16x128xf32>
    %17 = math.tanh %16 : vector<16x128xf32>
    %cst_8 = arith.constant 1.000000e+00 : f32
    %18 = vector.broadcast %cst_8 : f32 to vector<16x128xf32>
    %19 = arith.subf %18, %13 : vector<16x128xf32>
    %20 = arith.mulf %19, %17 : vector<16x128xf32>
    %c0_9 = arith.constant 0 : index
    %c0_10 = arith.constant 0 : index
    %21 = vector.load %arg6[%c0_9, %c0_10] : memref<16x128xf32, #tpu.memory_space<vmem>>, vector<16x128xf32>
    tpu.vector_store %arg6[%c0_9, %c0_10], %20 {strides = array<i32>} : memref<16x128xf32, #tpu.memory_space<vmem>>, vector<16x128xf32>,
    return
  }
  func.func @transform_0(%arg0: i32, %arg1: i32) -> (i32, i32) {
    %c0_i32 = arith.constant 0 : i32
    %c0_i32_0 = arith.constant 0 : i32
    return %arg1, %c0_i32 : i32, i32
  }
  func.func @transform_1(%arg0: i32, %arg1: i32) -> (i32, i32) {
    %c0_i32 = arith.constant 0 : i32
    %c0_i32_0 = arith.constant 0 : i32
    return %c0_i32, %arg0 : i32, i32
  }
  func.func @transform_2(%arg0: i32, %arg1: i32) -> (i32, i32) {
    %c0_i32 = arith.constant 0 : i32
    %c0_i32_0 = arith.constant 0 : i32
    return %c0_i32, %arg0 : i32, i32
  }
  func.func @transform_3(%arg0: i32, %arg1: i32) -> (i32, i32) {
    %c0_i32 = arith.constant 0 : i32
    %c0_i32_0 = arith.constant 0 : i32
    return %c0_i32, %arg0 : i32, i32
  }
  func.func @transform_4(%arg0: i32, %arg1: i32) -> (i32, i32) {
    %c0_i32 = arith.constant 0 : i32
    return %arg1, %arg0 : i32, i32
  }
}

</mosaic_0001>

<bundles_post_ra>
// kernel: tpu_custom_call.1
= control target key start
LH: loop header
LB: loop body
LE: loop exit
PB: predicated region body
PF: predicated region fallthrough
CT: control target
= control target key end

     0   :  { %9 = vsyncpa [#allocation3], 0  ;;  %s438_s0 = inlined_call_operand.hbm [shape: bf16[16,128], index: 0, kind: input, shape index: {}]   ;;  %s439_s1 = inlined_call_operand.hbm [shape: bf16[128,128], index: 1, kind: input, shape index: {}]   ;;  %s440_s2 = inlined_call_operand.vmem [shape: f32[1,128], index: 2, kind: input, shape index: {}]   ;;  %s441_s3 = inlined_call_operand.vmem [shape: f32[1,128], index: 3, kind: input, shape index: {}]   ;;  %s442_s4 = inlined_call_operand.hbm [shape: f32[16,128], index: 4, kind: output, shape index: {}]  }
   0x1   :  { %10 = vsyncpa [#allocation6], 0 }
   0x2   :  { %11 = vsyncpa [#allocation4], 0  ;;  %s362_s15 = smov [#allocation2]   ;;  %s290_s19 = scalar_lea.hbm %s438_s0, 128 }
   0x3   :  { %s17_s16 = sshll.u32 %s362_s15, 4  ;;  %p291_p0 = scmp.ne.s32.totalorder %s438_s0, %s290_s19  ;;  %s18_s16 = int_to_ptr.vmem [resolvable:$true] %s17_s16 }
   0x4   :  { %p294_p1 = scmp.lt.u32.totalorder %s290_s19, %s438_s0 }
   0x6   :  { %p296_p2 = pnand %p294_p1, %p291_p0 }
   0x8   :  { %299 = shalt.err (!%p296_p2)
}
   0x9   :  { %s300_s24 = scalar_lea.vmem %s18_s16, 128  ;;  %p305_p4 = scmp.lt.s32.totalorder %s18_s16, %s18_s16 }
   0xa   :  { %p301_p3 = scmp.ne.s32.totalorder %s18_s16, %s300_s24  ;;  %p306_p5 = scmp.lt.s32.totalorder %s300_s24, %s300_s24 }
   0xc   :  { %p307_p6 = por %p306_p5, %p305_p4 }
   0xe   :  { %p308_p7 = pnand %p307_p6, %p301_p3 }
  0x10   :  { %311 = shalt.err (!%p308_p7)
}
  0x11   :  { %s363_s25 = smov 64   ;;  %s364_s26 = smov 4  }
  0x12   :  { %23 = dma.hbm_to_vmem [thread:$0]  %s438_s0, 128, %s18_s16, [#allocation3], %s363_s25, %s363_s25, %s364_s26  }
  0x13   :  { %s365_s29 = smov [#allocation5]   ;;  %s312_s7 = scalar_lea.hbm %s439_s1, 1024 }
  0x14   :  { %s29_s30 = sshll.u32 %s365_s29, 4  ;;  %p313_p8 = scmp.ne.s32.totalorder %s439_s1, %s312_s7  ;;  %s30_s30 = int_to_ptr.vmem [resolvable:$true] %s29_s30 }
  0x15   :  { %p316_p9 = scmp.lt.u32.totalorder %s312_s7, %s439_s1 }
  0x17   :  { %p318_p10 = pnand %p316_p9, %p313_p8 }
  0x19   :  { %321 = shalt.err (!%p318_p10)
}
  0x1a   :  { %s322_s12 = scalar_lea.vmem %s30_s30, 1024  ;;  %p327_p12 = scmp.lt.s32.totalorder %s30_s30, %s30_s30 }
  0x1b   :  { %p323_p11 = scmp.ne.s32.totalorder %s30_s30, %s322_s12  ;;  %p328_p13 = scmp.lt.s32.totalorder %s322_s12, %s322_s12 }
  0x1d   :  { %p329_p0 = por %p328_p13, %p327_p12 }
  0x1f   :  { %p330_p1 = pnand %p329_p0, %p323_p11 }
  0x21   :  { %333 = shalt.err (!%p330_p1)
}
  0x22   :  { %35 = dma.hbm_to_vmem [thread:$0]  %s439_s1, 1024, %s30_s30, [#allocation6], %s363_s25, %s363_s25, %s364_s26  }
  0x23   :  { %356 = dma.done.wait [#allocation3], 128  }
  0x24   :  { %357 = vsyncadd [#allocation3], 4294967168 }
  0x25   :  { %358 = dma.done.wait [#allocation6], 1024  }
  0x26   :  { %359 = vsyncadd [#allocation6], 4294966272  ;;  %v366_v0 = vmov 0.0   ;;  %vm367_vm0 = vmmov 0   ;;  %v269_v1 = vld [vmem:[#allocation5] sm:$0xff]   ;;  %v270_v2 = vld [vmem:[#allocation5 + $0x8] sm:$0xff]  }
  0x27   :  { %240 = vmatprep.subr.bf16.mxu0 %v366_v0  ;;  %256 = vmatprep.mubr.msk.bf16.mxu0 %vm367_vm0, %v366_v0  ;;  %v271_v3 = vld [vmem:[#allocation5 + $0x10] sm:$0xff]   ;;  %v272_v4 = vld [vmem:[#allocation5 + $0x18] sm:$0xff]   ;;  %v273_v5 = vld [vmem:[#allocation5 + $0x20] sm:$0xff]  }
  0x28   :  { %241 = vmatpush3.bf16.msra.mxu0 %v269_v1  ;;  %v274_v6 = vld [vmem:[#allocation5 + $0x28] sm:$0xff]   ;;  %v275_v7 = vld [vmem:[#allocation5 + $0x30] sm:$0xff]   ;;  %v276_v8 = vld [vmem:[#allocation5 + $0x38] sm:$0xff]  }
  0x29   :  { %242 = vmatprep.subr.bf16.mxu0 %v366_v0  ;;  %v277_v9 = vld [vmem:[#allocation2] sm:$0xff]  }
  0x2a   :  { %v218_v10 = vld [vmem:[%s440_s2] ss:$0 sm:$0xff]  ;;  %s368_s2 = smov [#allocation7]  }
  0x2b   :  { %v228_v12 = vld [vmem:[%s441_s3] ss:$0 sm:$0xff]  ;;  %s205_s3 = sshll.u32 %s368_s2, 4  ;;  %s206_s3 = int_to_ptr.vmem [resolvable:$true] %s205_s3 }
  0x2c   :  { %243 = vmatpush3.bf16.msra.mxu0 %v270_v2  ;;  %s334_s17 = scalar_lea.vmem %s206_s3, 256  ;;  %p339_p3 = scmp.lt.s32.totalorder %s206_s3, %s206_s3 }
  0x2d   :  { %244 = vmatprep.subr.bf16.mxu0 %v366_v0  ;;  %p335_p2 = scmp.ne.s32.totalorder %s206_s3, %s334_s17  ;;  %p340_p4 = scmp.lt.s32.totalorder %s334_s17, %s334_s17 }
  0x2f   :  { %p341_p5 = por %p340_p4, %p339_p3 }
  0x30   :  { %245 = vmatpush3.bf16.msra.mxu0 %v271_v3 }
  0x31   :  { %246 = vmatprep.subr.bf16.mxu0 %v366_v0  ;;  %p342_p6 = pnand %p341_p5, %p335_p2 }
  0x34   :  { %247 = vmatpush3.bf16.msra.mxu0 %v272_v4 }
  0x35   :  { %248 = vmatprep.subr.bf16.mxu0 %v366_v0 }
  0x38   :  { %249 = vmatpush3.bf16.msra.mxu0 %v273_v5 }
  0x39   :  { %250 = vmatprep.subr.bf16.mxu0 %v366_v0 }
  0x3c   :  { %251 = vmatpush3.bf16.msra.mxu0 %v274_v6 }
  0x3d   :  { %252 = vmatprep.subr.bf16.mxu0 %v366_v0 }
  0x40   :  { %253 = vmatpush3.bf16.msra.mxu0 %v275_v7 }
  0x41   :  { %254 = vmatprep.subr.bf16.mxu0 %v366_v0 }
  0x44   :  { %255 = vmatpush3.bf16.msra.mxu0 %v276_v8 }
  0x47   :  { %257 = vmatmul.mubr.bf16.vlgmr.msra.gmra.mrb[0].mxu0 %v277_v9 }
 0x11a   :  { %v160_v11 = vpop.f32.mrb[0].mxu0 }
 0x11b   :  { %v161_v13 = vadd.f32 %v218_v10, %v160_v11  ;;  %v258_v14 = vpop.f32.mrb[1].mxu0 }
 0x11c   :  { %v163_v15 = vpop.f32.mrb[2].mxu0 }
 0x11d   :  { %v174_v16 = vadd.f32 %v228_v12, %v161_v13  ;;  %v164_v17 = vadd.f32 %v218_v10, %v163_v15  ;;  %v259_v18 = vpop.f32.mrb[3].mxu0 }
 0x11f   :  { %v229_v19 = vmul.f32 -1.442695, %v174_v16  ;;  %v175_v20 = vadd.f32 %v228_v12, %v164_v17 }
 0x121   :  { %278 = vpow2.f32 %v229_v19  ;;  %v230_v21 = vmul.f32 -1.442695, %v175_v20 }
 0x123   :  { %280 = vpow2.f32 %v230_v21 }
 0x12b   :  { %v279_v22 = vpop.eup %278 }
 0x12c   :  { %v182_v23 = vadd.f32 1.0, %v279_v22 }
 0x12d   :  { %v281_v24 = vpop.eup %280 }
 0x12e   :  { %282 = vrcp.f32 %v182_v23  ;;  %v183_v25 = vadd.f32 1.0, %v281_v24 }
 0x130   :  { %284 = vrcp.f32 %v183_v25 }
 0x138   :  { %v283_v26 = vpop.eup %282 }
 0x139   :  { %v188_v27 = vmul.f32 %v283_v26, %v228_v12  ;;  %v194_v32 = vsub.f32 1.0, %v283_v26 }
 0x13a   :  { %v285_v28 = vpop.eup %284 }
 0x13b   :  { %v190_v29 = vadd.f32 %v188_v27, %v161_v13  ;;  %v189_v30 = vmul.f32 %v285_v28, %v228_v12  ;;  %v195_v34 = vsub.f32 1.0, %v285_v28 }
 0x13d   :  { %286 = vtanh.f32 %v190_v29  ;;  %v191_v31 = vadd.f32 %v189_v30, %v164_v17 }
 0x13f   :  { %288 = vtanh.f32 %v191_v31 }
 0x147   :  { %v287_v33 = vpop.eup %286 }
 0x148   :  { %v196_v35 = vmul.f32 %v287_v33, %v194_v32 }
 0x149   :  { %v289_v36 = vpop.eup %288 }
 0x14a   :  { %v197_v37 = vmul.f32 %v289_v36, %v195_v34  ;;  %198 = vst [vmem:[#allocation7] sm:$0xff] %v196_v35 }
 0x14c   :  { %199 = vst [vmem:[#allocation7 + $0x8] sm:$0xff] %v197_v37 }
 0x14d   :  { %345 = shalt.err (!%p342_p6)
}
 0x14e   :  { %s346_s20 = scalar_lea.hbm %s442_s4, 256 }
 0x14f   :  { %p347_p7 = scmp.ne.s32.totalorder %s442_s4, %s346_s20  ;;  %p350_p8 = scmp.lt.u32.totalorder %s346_s20, %s442_s4 }
 0x151   :  { %p352_p9 = pnand %p350_p8, %p347_p7 }
 0x153   :  { %355 = shalt.err (!%p352_p9)
}
 0x154   :  { %s369_s25 = smov 128   ;;  %s370_s26 = smov 8  }
 0x155   :  { %211 = dma.vmem_to_hbm [thread:$0]  %s206_s3, 256, %s442_s4, [#allocation4], %s369_s25, %s369_s25, %s370_s26  }
 0x156   :  { %360 = dma.done.wait [#allocation4], 256  }
 0x157   :  { %361 = vsyncadd [#allocation4], 4294967040 }
 0x158   :  { %215 = vsyncpa [#allocation3], 1 }
 0x159   :  { %216 = vsyncpa [#allocation6], 1 }
 0x15a   :  { %217 = vsyncpa [#allocation4], 1 }

</bundles_post_ra>
